<compile_context>
chip_gen: v6e
topology: v6e:2x2x1
jax: 0.10.0
libtpu: 0.0.40
codegen_flags: <defaults>
</compile_context>

<pallas_src>
import jax
import jax.numpy as jnp
import numpy as np
from jax.experimental import pallas as pl
from jax.experimental.pallas import tpu as pltpu


def _round_up(a, m):
    return (a + m - 1) // m * m


def encode_block_forward(x, w, b, gamma, beta, *, eps=1e-5, negative_slope=0.2,
                         tm=512, matmul_dtype=jnp.bfloat16):
    """Forward pass of EncodeBlock.

    x:(N,C_in,H,W)  w:(C_out,C_in,5,5)  b,gamma,beta:(C_out,)
    Returns (N, C_out, Ho, Wo) float32, Ho = (H+4-5)//2 + 1 (same for W).
    BatchNorm uses batch statistics (PyTorch training-mode forward, biased variance).
    `b` is accepted for API parity but not applied in-kernel: BN's mean subtraction
    cancels a pre-BN per-channel bias exactly.
    """
    N, C_in, H, W = x.shape
    C_out = w.shape[0]
    K, S, P = 5, 2, 2
    Ho = (H + 2 * P - K) // S + 1
    Wo = (W + 2 * P - K) // S + 1
    M = N * Ho * Wo
    Kf = C_in * K * K

    gamma = gamma.astype(jnp.float32)
    beta = beta.astype(jnp.float32)

    # ---- JAX glue: im2col, materialized directly in the MXU dtype (bf16) ----------------
    x_c = x.astype(matmul_dtype)
    w_c = w.astype(matmul_dtype)
    x_pad = jnp.pad(x_c, ((0, 0), (0, 0), (P, P), (P, P)))
    taps = [x_pad[:, :, kh:kh + S * Ho:S, kw:kw + S * Wo:S]      # (N, C_in, Ho, Wo)
            for kh in range(K) for kw in range(K)]
    patches = jnp.stack(taps, axis=2)                            # (N, C_in, 25, Ho, Wo)
    patches = patches.transpose(0, 3, 4, 1, 2).reshape(M, Kf)    # feature = ci*25 + kh*5 + kw
    w_mat = w_c.reshape(C_out, Kf).T                             # (Kf, C_out), same order

    # ---- pad to MXU / (8,128)-friendly shapes -------------------------------------------
    Cp = _round_up(C_out, 128)          # lane-dense output channels
    Kp = _round_up(Kf, 32)              # contraction dim: sublane multiple only (NOT 128);
                                        # single MXU pass, no K grid axis / acc scratch.
    tm = min(tm, _round_up(M, 16))      # don't over-pad tiny problems
    Mp = _round_up(M, tm)
    nm = Mp // tm

    patches_p = jnp.pad(patches, ((0, Mp - M), (0, Kp - Kf)))
    w_p = jnp.pad(w_mat, ((0, Kp - Kf), (0, Cp - C_out)))
    gamma_p = jnp.pad(gamma, (0, Cp - C_out))
    beta_p = jnp.pad(beta, (0, Cp - C_out))

    # ---- Kernel A: conv (single-pass im2col matmul) + per-tile partial BN stats ---------
    def conv_stats_kernel(p_ref, w_ref, conv_ref, stats_ref):
        acc = jnp.dot(p_ref[...], w_ref[...], preferred_element_type=jnp.float32)  # (tm, Cp)
        conv_ref[...] = acc.astype(conv_ref.dtype)
        # Rows padded past the true M hold all-zero patches and there is no bias, so they
        # contribute exactly 0 to both partial sums -> no masking needed.
        s0 = jnp.sum(acc, axis=0, keepdims=True)              # (1, Cp) sum
        s1 = jnp.sum(acc * acc, axis=0, keepdims=True)        # (1, Cp) sum of squares
        row = jax.lax.broadcasted_iota(jnp.int32, (8, Cp), 0)
        stats_ref[...] = jnp.where(                            # single full (unmasked) store
            row == 0, jnp.broadcast_to(s0, (8, Cp)),
            jnp.where(row == 1, jnp.broadcast_to(s1, (8, Cp)), 0.0))

    conv_out, stats = pl.pallas_call(
        conv_stats_kernel,
        out_shape=(jax.ShapeDtypeStruct((Mp, Cp), matmul_dtype),      # bf16 intermediate
                   jax.ShapeDtypeStruct((nm * 8, Cp), jnp.float32)),  # per-tile partial stats
        grid=(nm,),
        in_specs=[
            pl.BlockSpec((tm, Kp), lambda i: (i, 0)),     # im2col patches tile
            pl.BlockSpec((Kp, Cp), lambda i: (0, 0)),     # full weight, VMEM-resident
        ],
        out_specs=(
            pl.BlockSpec((tm, Cp), lambda i: (i, 0)),     # conv output tile (lane-dense)
            pl.BlockSpec((8, Cp), lambda i: (i, 0)),      # per-tile stats block
        ),
        compiler_params=pltpu.CompilerParams(
            dimension_semantics=("parallel",),            # no cross-tile accumulator anymore
            vmem_limit_bytes=48 * 1024 * 1024),           # <= v7x 64 MiB physical, headroom
    )(patches_p, w_p)

    # ---- wrapper: combine per-tile stats (Chan / parallel-Welford) and fold BN ----------
    stats = stats.reshape(nm, 8, Cp)
    sum_t = stats[:, 0, :]                                               # (nm, Cp)
    sq_t = stats[:, 1, :]
    n_t = jnp.minimum(tm, M - jnp.arange(nm) * tm).astype(jnp.float32)   # valid rows / tile
    mean_t = sum_t / n_t[:, None]
    m2_t = jnp.maximum(sq_t - sum_t * mean_t, 0.0)
    mean = jnp.sum(sum_t, axis=0) / M
    m2 = jnp.sum(m2_t, axis=0) + jnp.sum(n_t[:, None] * (mean_t - mean[None, :]) ** 2, axis=0)
    var = jnp.maximum(m2 / M, 0.0)                        # biased variance (training BN)
    inv = jax.lax.rsqrt(var + eps)
    scale = (gamma_p * inv).reshape(1, Cp)
    shift = (beta_p - mean * gamma_p * inv).reshape(1, Cp)

    # ---- Kernel B: y = conv*scale + shift, LeakyReLU(0.2); f32 math, parallel M tiles ----
    def bn_lrelu_kernel(y_ref, sc_ref, sh_ref, o_ref):
        y = y_ref[...].astype(jnp.float32) * sc_ref[...] + sh_ref[...]
        o_ref[...] = jnp.where(y > 0, y, negative_slope * y)

    y_full = pl.pallas_call(
        bn_lrelu_kernel,
        out_shape=jax.ShapeDtypeStruct((Mp, Cp), jnp.float32),
        grid=(nm,),
        in_specs=[
            pl.BlockSpec((tm, Cp), lambda i: (i, 0)),
            pl.BlockSpec((1, Cp), lambda i: (0, 0)),
            pl.BlockSpec((1, Cp), lambda i: (0, 0)),
        ],
        out_specs=pl.BlockSpec((tm, Cp), lambda i: (i, 0)),
        compiler_params=pltpu.CompilerParams(
            dimension_semantics=("parallel",),            # megacore-shardable
            vmem_limit_bytes=48 * 1024 * 1024),
    )(conv_out, scale, shift)

    # ---- back to NCHW at the module boundary.  In a full encoder keep activations
    # channels-last ([M, C]) between blocks and skip this extra HBM pass.
    out = y_full[:M, :C_out].reshape(N, Ho, Wo, C_out).transpose(0, 3, 1, 2)
    return out


def _reference(x, w, b, gamma, beta, eps=1e-5, slope=0.2):
    conv = jax.lax.conv_general_dilated(
        x, w, window_strides=(2, 2), padding=((2, 2), (2, 2)),
        dimension_numbers=("NCHW", "OIHW", "NCHW")) + b.reshape(1, -1, 1, 1)
    mean = conv.mean(axis=(0, 2, 3), keepdims=True)
    var = ((conv - mean) ** 2).mean(axis=(0, 2, 3), keepdims=True)
    bn = (conv - mean) / jnp.sqrt(var + eps) * gamma.reshape(1, -1, 1, 1) \
        + beta.reshape(1, -1, 1, 1)
    return jnp.where(bn > 0, bn, slope * bn)


if __name__ == "__main__":
    # Module-level constants from the PyTorch file: in_channels=1, out_channels=2.
    N, C_in, C_out, H, W = 2, 1, 2, 16, 16

    key = jax.random.PRNGKey(0)
    k1, k2, k3 = jax.random.split(key, 3)

    fan_in = C_in * 5 * 5
    bound = 1.0 / float(np.sqrt(fan_in))
    w = jax.random.uniform(k1, (C_out, C_in, 5, 5), jnp.float32, -bound, bound)
    b = jax.random.uniform(k2, (C_out,), jnp.float32, -bound, bound)
    gamma = jnp.ones((C_out,), jnp.float32)   # nn.BatchNorm2d default init
    beta = jnp.zeros((C_out,), jnp.float32)

    x = jax.random.normal(k3, (N, C_in, H, W), jnp.float32)

    out = jax.block_until_ready(encode_block_forward(x, w, b, gamma, beta))

    ref = _reference(x, w, b, gamma, beta)
    # bf16 MXU inputs + bf16 conv intermediate -> tolerance loosened vs the f32 reference.
    np.testing.assert_allclose(np.asarray(out), np.asarray(ref), rtol=3e-2, atol=3e-2)

    print("KERNEL_OK")
</pallas_src>

<mosaic_0001>
module attributes {stable_mosaic.version = 11 : i64} {
  func.func @conv_stats_kernel(%arg0: i32, %arg1: memref<128x32xbf16, #tpu.memory_space<vmem>>, %arg2: memref<32x128xbf16, #tpu.memory_space<vmem>>, %arg3: memref<128x128xbf16, #tpu.memory_space<vmem>>, %arg4: memref<8x128xf32, #tpu.memory_space<vmem>>) attributes {dimension_semantics = [#tpu.dimension_semantics<parallel>], iteration_bounds = array<i64: 1>, scalar_prefetch = 0 : i64, scratch_operands = 0 : i64, tpu.core_type = #tpu.core_type<tc>, window_params = [{transform_indices = @transform_0, window_bounds = array<i64: 128, 32>}, {pipeline_mode = #tpu.pipeline_mode<synchronous>, transform_indices = @transform_1, window_bounds = array<i64: 32, 128>}, {transform_indices = @transform_2, window_bounds = array<i64: 128, 128>}, {transform_indices = @transform_3, window_bounds = array<i64: 8, 128>}]} {
    %c0 = arith.constant 0 : index
    %c0_0 = arith.constant 0 : index
    %0 = vector.load %arg1[%c0, %c0_0] : memref<128x32xbf16, #tpu.memory_space<vmem>>, vector<128x32xbf16>
    %c0_1 = arith.constant 0 : index
    %c0_2 = arith.constant 0 : index
    %1 = vector.load %arg2[%c0_1, %c0_2] : memref<32x128xbf16, #tpu.memory_space<vmem>>, vector<32x128xbf16>
    %cst = arith.constant dense<0.000000e+00> : vector<128x128xf32>
    %2 = tpu.matmul %0, %1, %cst {dimension_numbers = #tpu.dot_dimension_numbers<[1], [0], [0], [1], [0, 0, 1, 1], [], []>} : vector<128x32xbf16>, vector<32x128xbf16>, vector<128x128xf32> -> vector<128x128xf32>
    %3 = arith.truncf %2 : vector<128x128xf32> to vector<128x128xbf16>
    %c0_3 = arith.constant 0 : index
    %c0_4 = arith.constant 0 : index
    %4 = vector.load %arg3[%c0_3, %c0_4] : memref<128x128xbf16, #tpu.memory_space<vmem>>, vector<128x128xbf16>
    tpu.vector_store %arg3[%c0_3, %c0_4], %3 {strides = array<i32>} : memref<128x128xbf16, #tpu.memory_space<vmem>>, vector<128x128xbf16>,
    %cst_5 = arith.constant dense<0.000000e+00> : vector<128xf32>
    %5 = vector.multi_reduction <add>, %2, %cst_5 [0] : vector<128x128xf32> to vector<128xf32>
    %6 = vector.shape_cast %5 : vector<128xf32> to vector<1x128xf32>
    %7 = arith.mulf %2, %2 : vector<128x128xf32>
    %cst_6 = arith.constant dense<0.000000e+00> : vector<128xf32>
    %8 = vector.multi_reduction <add>, %7, %cst_6 [0] : vector<128x128xf32> to vector<128xf32>
    %9 = vector.shape_cast %8 : vector<128xf32> to vector<1x128xf32>
    %10 = tpu.iota {dimensions = array<i32: 0>} : vector<8x128xi32>
    %c0_i32 = arith.constant 0 : i32
    %11 = vector.broadcast %c0_i32 : i32 to vector<8x128xi32>
    %12 = arith.cmpi eq, %10, %11 : vector<8x128xi32>
    %13 = vector.shape_cast %6 : vector<1x128xf32> to vector<1x128xf32>
    %14 = vector.broadcast %13 : vector<1x128xf32> to vector<8x128xf32>
    %c1_i32 = arith.constant 1 : i32
    %15 = vector.broadcast %c1_i32 : i32 to vector<8x128xi32>
    %16 = arith.cmpi eq, %10, %15 : vector<8x128xi32>
    %17 = vector.shape_cast %9 : vector<1x128xf32> to vector<1x128xf32>
    %18 = vector.broadcast %17 : vector<1x128xf32> to vector<8x128xf32>
    %cst_7 = arith.constant 0.000000e+00 : f32
    %19 = vector.broadcast %cst_7 : f32 to vector<8x128xf32>
    %20 = arith.select %16, %18, %19 : vector<8x128xi1>, vector<8x128xf32>
    %21 = arith.select %12, %14, %20 : vector<8x128xi1>, vector<8x128xf32>
    %c0_8 = arith.constant 0 : index
    %c0_9 = arith.constant 0 : index
    %22 = vector.load %arg4[%c0_8, %c0_9] : memref<8x128xf32, #tpu.memory_space<vmem>>, vector<8x128xf32>
    tpu.vector_store %arg4[%c0_8, %c0_9], %21 {strides = array<i32>} : memref<8x128xf32, #tpu.memory_space<vmem>>, vector<8x128xf32>,
    return
  }
  func.func @transform_0(%arg0: i32) -> (i32, i32) {
    %c0_i32 = arith.constant 0 : i32
    %c0_i32_0 = arith.constant 0 : i32
    return %arg0, %c0_i32 : i32, i32
  }
  func.func @transform_1(%arg0: i32) -> (i32, i32) {
    %c0_i32 = arith.constant 0 : i32
    %c0_i32_0 = arith.constant 0 : i32
    %c0_i32_1 = arith.constant 0 : i32
    return %c0_i32, %c0_i32_0 : i32, i32
  }
  func.func @transform_2(%arg0: i32) -> (i32, i32) {
    %c0_i32 = arith.constant 0 : i32
    %c0_i32_0 = arith.constant 0 : i32
    return %arg0, %c0_i32 : i32, i32
  }
  func.func @transform_3(%arg0: i32) -> (i32, i32) {
    %c0_i32 = arith.constant 0 : i32
    %c0_i32_0 = arith.constant 0 : i32
    return %arg0, %c0_i32 : i32, i32
  }
}

</mosaic_0001>

<bundles_post_ra>
// kernel: tpu_custom_call.1
= control target key start
LH: loop header
LB: loop body
LE: loop exit
PB: predicated region body
PF: predicated region fallthrough
CT: control target
= control target key end

     0   :  { %9 = vsyncpa [#allocation3], 0  ;;  %vm88_vm0 = vcmask 261120   ;;  %s666_s0 = inlined_call_operand.vmem [shape: bf16[128,32], index: 0, kind: input, shape index: {}]   ;;  %s667_s1 = inlined_call_operand.vmem [shape: bf16[32,128], index: 1, kind: input, shape index: {}]   ;;  %s668_s2 = inlined_call_operand.hbm [shape: bf16[128,128], index: 2, kind: output, shape index: {0}]   ;;  %s669_s3 = inlined_call_operand.hbm [shape: f32[8,128], index: 3, kind: output, shape index: {1}]  }
   0x1   :  { %v520_v0 = vld [vmem:[%s667_s1 + $0x8] sm:$0xff]   ;;  %v521_v1 = vld [vmem:[%s667_s1] sm:$0xff]   ;;  %v524_v4 = vld [vmem:[%s666_s0 + $0x10] sm:$0xff]  }
   0x2   :  { %492 = vmatprep.subr.bf16.mxu0 %v520_v0  ;;  %v522_v2 = vld [vmem:[%s666_s0] sm:$0xff]   ;;  %512 = vmatprep.subr.bf16.mxu1 %v520_v0  ;;  %v523_v3 = vld [vmem:[%s666_s0 + $0x8] sm:$0xff]   ;;  %v528_v7 = vld [vmem:[%s666_s0 + $0x30] sm:$0xff]  }
   0x3   :  { %493 = vmatpush3.bf16.msra.mxu0 %v520_v0  ;;  %514 = vmatpush3.bf16.msra.mxu1 %v520_v0  ;;  %v526_v5 = vld [vmem:[%s666_s0 + $0x20] sm:$0xff]   ;;  %v527_v6 = vld [vmem:[%s666_s0 + $0x28] sm:$0xff]  }
   0x4   :  { %494 = vmatprep.subr.bf16.mxu0 %v521_v1  ;;  %496 = vmatprep.mubr.msk.bf16.mxu0 %vm88_vm0, %v522_v2 }
   0x5   :  { %513 = vmatprep.subr.bf16.mxu1 %v521_v1  ;;  %504 = vmatprep.mubr.msk.bf16.mxu1 %vm88_vm0, %v526_v5 }
   0x7   :  { %495 = vmatpush3.bf16.msra.mxu0 %v521_v1  ;;  %515 = vmatpush3.bf16.msra.mxu1 %v521_v1 }
   0xa   :  { %497 = vmatmul.mubr.msk.bf16.vlgmr.msra.gmra.mxu0 %vm88_vm0, %v523_v3  ;;  %505 = vmatmul.mubr.msk.bf16.vlgmr.msra.gmra.mxu1 %vm88_vm0, %v527_v6 }
   0xb   :  { %10 = vsyncpa [#allocation5], 0  ;;  %500 = vmatprep.mubr.msk.bf16.mxu0 %vm88_vm0, %v524_v4  ;;  %508 = vmatprep.mubr.msk.bf16.mxu1 %vm88_vm0, %v528_v7  ;;  %v525_v8 = vld [vmem:[%s666_s0 + $0x18] sm:$0xff]  }
   0xc   :  { %v529_v9 = vld [vmem:[%s666_s0 + $0x38] sm:$0xff]   ;;  %s574_s0 = smov [#allocation2]  }
   0xd   :  { %s360_s4 = sshll.u32 %s574_s0, 4  ;;  %s361_s4 = int_to_ptr.vmem [resolvable:$true] %s360_s4 }
   0xe   :  { %s530_s5 = scalar_lea.vmem %s361_s4, 1024  ;;  %p535_p1 = scmp.lt.s32.totalorder %s361_s4, %s361_s4 }
   0xf   :  { %p531_p0 = scmp.ne.s32.totalorder %s361_s4, %s530_s5  ;;  %p536_p2 = scmp.lt.s32.totalorder %s530_s5, %s530_s5 }
  0x11   :  { %p537_p3 = por %p536_p2, %p535_p1 }
  0x12   :  { %501 = vmatmul.mubr.msk.bf16.gmra.mxu0 %vm88_vm0, %v525_v8  ;;  %509 = vmatmul.mubr.msk.bf16.gmra.mxu1 %vm88_vm0, %v529_v9 }
  0x13   :  { %p538_p4 = pnand %p537_p3, %p531_p0 }
  0xca   :  { %v498_v10 = vpop.f32.mrf.mxu0  ;;  %v636_v11 = vpop.f32.mrf.mxu1 }
  0xcb   :  { %v313_v27 = vmul.f32 %v498_v10, %v498_v10 }
  0xcc   :  { %v147_v12 = vpop.f32.mrf.mxu0  ;;  %v638_v13 = vpop.f32.mrf.mxu1 }
  0xcd   :  { %v311_v18 = vmul.f32 %v147_v12, %v147_v12 }
  0xce   :  { %v499_v14 = vpop.f32.mrf.mxu0  ;;  %v640_v15 = vpop.f32.mrf.mxu1 }
  0xcf   :  { %v443_v16 = vpack.c.bf16 %v499_v14, %v498_v10  ;;  %v463_v17 = vpack.c.bf16 %v640_v15, %v636_v11  ;;  %v314_v32 = vmul.f32 %v499_v14, %v499_v14 }
  0xd0   :  { %v150_v19 = vpop.f32.mrf.mxu0  ;;  %v182_v20 = vpop.f32.mrf.mxu1 }
  0xd1   :  { %475 = vst [vmem:[#allocation2 + $0x8] sm:$0xff] %v443_v16   ;;  %v438_v21 = vpack.c.bf16 %v150_v19, %v147_v12  ;;  %v290_v22 = vadd.f32 %v150_v19, %v147_v12  ;;  %v312_v23 = vmul.f32 %v150_v19, %v150_v19  ;;  %479 = vst [vmem:[#allocation2 + $0x28] sm:$0xff] %v463_v17  }
  0xd2   :  { %v458_v24 = vpack.c.bf16 %v182_v20, %v638_v13  ;;  %v502_v25 = vpop.f32.mrf.mxu0  ;;  %v645_v26 = vpop.f32.mrf.mxu1 }
  0xd3   :  { %439 = vst [vmem:[#allocation2] sm:$0xff] %v438_v21   ;;  %v291_v28 = vadd.f32 %v498_v10, %v290_v22  ;;  %v327_v29 = vadd.f32 %v312_v23, %v311_v18  ;;  %v317_v49 = vmul.f32 %v502_v25, %v502_v25 }
  0xd4   :  { %478 = vst [vmem:[#allocation2 + $0x20] sm:$0xff] %v458_v24   ;;  %v163_v30 = vpop.f32.mrf.mxu0  ;;  %v195_v31 = vpop.f32.mrf.mxu1 }
  0xd5   :  { %v328_v33 = vadd.f32 %v327_v29, %v313_v27  ;;  %v292_v34 = vadd.f32 %v499_v14, %v291_v28  ;;  %v315_v38 = vmul.f32 %v163_v30, %v163_v30 }
  0xd6   :  { %v503_v35 = vpop.f32.mrf.mxu0  ;;  %v511_v36 = vpop.f32.mrf.mxu1 }
  0xd7   :  { %v293_v37 = vadd.f32 %v292_v34, %v163_v30  ;;  %v329_v39 = vadd.f32 %v328_v33, %v314_v32  ;;  %v453_v40 = vpack.c.bf16 %v503_v35, %v502_v25  ;;  %v473_v42 = vpack.c.bf16 %v511_v36, %v645_v26 }
  0xd8   :  { %v166_v41 = vpop.f32.mrf.mxu0  ;;  %v198_v43 = vpop.f32.mrf.mxu1  ;;  %v318_v52 = vmul.f32 %v503_v35, %v503_v35 }
  0xd9   :  { %v330_v44 = vadd.f32 %v329_v39, %v315_v38  ;;  %477 = vst [vmem:[#allocation2 + $0x18] sm:$0xff] %v453_v40   ;;  %v448_v45 = vpack.c.bf16 %v166_v41, %v163_v30  ;;  %v294_v46 = vadd.f32 %v293_v37, %v166_v41  ;;  %v316_v47 = vmul.f32 %v166_v41, %v166_v41 }
  0xda   :  { %481 = vst [vmem:[#allocation2 + $0x38] sm:$0xff] %v473_v42   ;;  %v468_v48 = vpack.c.bf16 %v198_v43, %v195_v31 }
  0xdb   :  { %476 = vst [vmem:[#allocation2 + $0x10] sm:$0xff] %v448_v45   ;;  %v295_v50 = vadd.f32 %v502_v25, %v294_v46  ;;  %v331_v51 = vadd.f32 %v330_v44, %v316_v47 }
  0xdc   :  { %480 = vst [vmem:[#allocation2 + $0x30] sm:$0xff] %v468_v48  }
  0xdd   :  { %v296_v53 = vadd.f32 %v503_v35, %v295_v50  ;;  %v332_v54 = vadd.f32 %v331_v51, %v317_v49 }
  0xde   :  { %541 = shalt.err (!%p538_p4)
}
  0xdf   :  { %s575_s6 = smov 64   ;;  %s576_s7 = smov 4   ;;  %v319_v55 = vmul.f32 %v638_v13, %v638_v13  ;;  %v333_v56 = vadd.f32 %v332_v54, %v318_v52  ;;  %v297_v57 = vadd.f32 %v296_v53, %v638_v13  ;;  %v320_v59 = vmul.f32 %v182_v20, %v182_v20 }
  0xe0   :  { %366 = dma.vmem_to_hbm [thread:$0]  %s361_s4, 1024, %s668_s2, [#allocation3], %s575_s6, %s575_s6, %s576_s7   ;;  %v321_v61 = vmul.f32 %v636_v11, %v636_v11  ;;  %v322_v0 = vmul.f32 %v640_v15, %v640_v15  ;;  %v323_v4 = vmul.f32 %v195_v31, %v195_v31  ;;  %v324_v8 = vmul.f32 %v198_v43, %v198_v43 }
  0xe1   :  { %v298_v58 = vadd.f32 %v297_v57, %v182_v20  ;;  %v334_v60 = vadd.f32 %v333_v56, %v319_v55  ;;  %v325_v9 = vmul.f32 %v645_v26, %v645_v26  ;;  %s577_s2 = smov [#allocation4]  }
  0xe2   :  { %s373_s10 = sshll.u32 %s577_s2, 4  ;;  %s374_s10 = int_to_ptr.vmem [resolvable:$true] %s373_s10 }
  0xe3   :  { %v299_v62 = vadd.f32 %v636_v11, %v298_v58  ;;  %v335_v63 = vadd.f32 %v334_v60, %v320_v59  ;;  %v326_v11 = vmul.f32 %v511_v36, %v511_v36  ;;  %s550_s11 = scalar_lea.vmem %s374_s10, 128  ;;  %p555_p6 = scmp.lt.s32.totalorder %s374_s10, %s374_s10 }
  0xe4   :  { %p551_p5 = scmp.ne.s32.totalorder %s374_s10, %s550_s11  ;;  %p556_p7 = scmp.lt.s32.totalorder %s550_s11, %s550_s11 }
  0xe5   :  { %v336_v1 = vadd.f32 %v335_v63, %v321_v61  ;;  %v300_v2 = vadd.f32 %v640_v15, %v299_v62  ;;  %v348_v15 = vlaneseq }
  0xe6   :  { %p557_p8 = por %p556_p7, %p555_p6 }
  0xe7   :  { %v301_v3 = vadd.f32 %v300_v2, %v195_v31  ;;  %v337_v5 = vadd.f32 %v336_v1, %v322_v0  ;;  %v349_v24 = vshrl.u32 %v348_v15, 7 }
  0xe8   :  { %p558_p9 = pnand %p557_p8, %p551_p5 }
  0xe9   :  { %v338_v6 = vadd.f32 %v337_v5, %v323_v4  ;;  %v302_v7 = vadd.f32 %v301_v3, %v198_v43  ;;  %vm351_vm1 = vcmp.eq.s32.totalorder %v349_v24, 1  ;;  %vm350_vm2 = vcmp.eq.s32.totalorder %v349_v24, 0 }
  0xeb   :  { %v303_v10 = vadd.f32 %v645_v26, %v302_v7  ;;  %v339_v12 = vadd.f32 %v338_v6, %v324_v8 }
  0xed   :  { %v304_v13 = vadd.f32 %v511_v36, %v303_v10  ;;  %v340_v14 = vadd.f32 %v339_v12, %v325_v9 }
  0xef   :  { %v305_v16 = vrot.slane %v304_v13, 4  ;;  %v341_v17 = vadd.f32 %v340_v14, %v326_v11 }
  0xf1   :  { %v306_v18 = vadd.f32 %v305_v16, %v304_v13  ;;  %v342_v19 = vrot.slane %v341_v17, 4 }
  0xf3   :  { %v307_v20 = vrot.slane %v306_v18, 2  ;;  %v343_v21 = vadd.f32 %v342_v19, %v341_v17 }
  0xf5   :  { %v308_v22 = vadd.f32 %v307_v20, %v306_v18  ;;  %v344_v23 = vrot.slane %v343_v21, 2 }
  0xf7   :  { %v345_v25 = vadd.f32 %v344_v23, %v343_v21  ;;  %v309_v27 = vrot.slane %v308_v22, 1 }
  0xf9   :  { %v346_v28 = vrot.slane %v345_v25, 1  ;;  %v310_v29 = vadd.f32 %v309_v27, %v308_v22 }
  0xfb   :  { %v347_v26 = vadd.f32 %v346_v28, %v345_v25 }
  0xfd   :  { %v352_v30 = vsel %vm351_vm1, %v347_v26, 0.0 }
  0xfe   :  { %v353_v31 = vsel %vm350_vm2, %v310_v29, %v352_v30 }
  0xff   :  { %354 = vst [vmem:[#allocation4] sm:$0xff] %v353_v31 }
 0x100   :  { %561 = shalt.err (!%p558_p9)
}
 0x101   :  { %376 = dma.vmem_to_hbm [thread:$0]  %s374_s10, 128, %s669_s3, [#allocation5]  }
 0x102   :  { %570 = dma.done.wait [#allocation3], 1024  }
 0x103   :  { %571 = vsyncadd [#allocation3], 4294966272 }
 0x104   :  { %572 = dma.done.wait [#allocation5], 128  }
 0x105   :  { %573 = vsyncadd [#allocation5], 4294967168 }
 0x106   :  { %383 = vsyncpa [#allocation3], 1 }
 0x107   :  { %384 = vsyncpa [#allocation5], 1 }

</bundles_post_ra>
